<compile_context>
chip_gen: v5e
topology: v5e:2x2
jax: 0.10.0
libtpu: 0.0.40
codegen_flags: <defaults>
</compile_context>

<pallas_src>
import functools

import jax
import jax.numpy as jnp
from jax.experimental import pallas as pl
from jax.experimental.pallas import tpu as pltpu


def _round_up(x, m):
    return (x + m - 1) // m * m


def ent_partial_kernel(x_ref, o_ref, *, true_b, true_c, needs_row_mask):
    """Accumulate this core's sum of softmax(x) rows into o_ref (8, Cp)."""
    c = pl.program_id(0)            # core-split axis (CORE_PARALLEL when ncores>1)
    i = pl.program_id(1)            # batch-tile axis ("arbitrary", reduction)
    nbpc = pl.num_programs(1)
    tb, cp = x_ref.shape

    @pl.when(i == 0)
    def _():
        o_ref[...] = jnp.zeros_like(o_ref)

    x = x_ref[...].astype(jnp.float32)                    # (tb, Cp)

    # Mask overhanging class lanes BEFORE the row max so unspecified data in
    # the padded lanes (possibly NaN/Inf) can never corrupt valid lanes.
    if true_c < cp:
        lane = jax.lax.broadcasted_iota(jnp.int32, (tb, cp), 1)
        x = jnp.where(lane < true_c, x, -jnp.inf)

    # Numerically-stable softmax over the class (lane) axis.
    row_max = jnp.max(x, axis=1, keepdims=True)
    e = jnp.exp(x - row_max)                               # pad lanes -> exactly 0
    row_sum = jnp.sum(e, axis=1, keepdims=True)
    inv = pl.reciprocal(row_sum, approx=False)             # EUP, not a VALU divide
    probs = e * inv                                        # (tb, Cp)

    def accumulate(p):
        # Fold the tile's rows onto 8 sublanes and accumulate (pure VPU adds).
        o_ref[...] += jnp.sum(p.reshape(tb // 8, 8, cp), axis=0)

    if not needs_row_mask:
        # B is an exact multiple of the tile coverage: no masking anywhere.
        accumulate(probs)
    else:
        tile0 = (c * nbpc + i) * tb                        # logical first row

        # Fast path: interior tiles skip the iota/compare/select entirely.
        @pl.when(tile0 + tb <= true_b)
        def _():
            accumulate(probs)

        # Boundary (or fully-out-of-range, clamped) tiles: mask AFTER the
        # softmax so garbage rows are discarded by the select.
        @pl.when(tile0 + tb > true_b)
        def _():
            row_ids = jax.lax.broadcasted_iota(jnp.int32, (tb, 1), 0)
            accumulate(jnp.where(tile0 + row_ids < true_b, probs, 0.0))


def ent_loss(x, *, tb=None, ncores=1):
    """x: (B, C) float array.  Returns scalar f32 entropy of the mean softmax.

    ncores: set to 2 on v7x (2 TensorCores per chip) to split the batch
    reduction across cores via CORE_PARALLEL; keep 1 on v5e / v6e.
    """
    B, C = x.shape
    Cp = _round_up(max(C, 128), 128)
    itemsize = jnp.dtype(x.dtype).itemsize

    # Batch tile: ~2 MiB per input buffer (amortizes the ~0.35us grid-step
    # overhead; ~85-90% of the HBM roofline), rows a multiple of 8, capped at
    # the (rounded-up) batch so tiny inputs stay a single small tile.
    if tb is None:
        budget = 2 * 1024 * 1024
        tb = (budget // (Cp * itemsize)) // 8 * 8
        tb = max(8, min(8192, tb))
    tb = min(tb, _round_up(B, 8))
    tb = max(8, (tb // 8) * 8)

    nb_total = -(-B // tb)
    if ncores > 1 and nb_total < ncores:
        ncores = 1
    nb_per_core = -(-nb_total // ncores)
    last_blk = nb_total - 1
    coverage = ncores * nb_per_core * tb
    needs_row_mask = coverage > B        # only then does any tile overhang B

    # Explicit VMEM budget: double-buffered input tile + resident output
    # block + f32 softmax temporaries + headroom (raises v5e's 16 MiB scoped
    # default; stays well under v7x's 64 MiB physical VMEM).
    in_buf = 2 * tb * Cp * itemsize
    out_buf = 2 * 8 * Cp * 4
    temps = 4 * tb * Cp * 4
    vmem_limit = int(min(48 << 20, max(32 << 20, in_buf + out_buf + temps + (4 << 20))))

    if ncores > 1:
        # Real 2-TC split (v7x).  Clamp fully-out-of-range block indices from
        # an odd tile count; those tiles are zeroed by the in-kernel row mask.
        in_map = lambda c, i: (jnp.minimum(c * nb_per_core + i, last_blk), 0)
        dim_sem = (pltpu.CORE_PARALLEL, pltpu.ARBITRARY)
    else:
        in_map = lambda c, i: (i, 0)
        dim_sem = ("arbitrary", "arbitrary")

    kernel = functools.partial(
        ent_partial_kernel, true_b=B, true_c=C, needs_row_mask=needs_row_mask)

    partials = pl.pallas_call(
        kernel,
        out_shape=jax.ShapeDtypeStruct((ncores * 8, Cp), jnp.float32),
        grid_spec=pltpu.PrefetchScalarGridSpec(
            num_scalar_prefetch=0,
            grid=(ncores, nb_per_core),
            in_specs=[pl.BlockSpec((tb, Cp), in_map)],
            out_specs=pl.BlockSpec((8, Cp), lambda c, i: (c, 0)),
        ),
        compiler_params=pltpu.CompilerParams(
            dimension_semantics=dim_sem,
            vmem_limit_bytes=vmem_limit,
        ),
    )(x)

    # Tiny O(C) epilogue in plain JAX: combine per-core/per-sublane partials,
    # divide by the true batch size, entropy with a 0*log(0) guard (pad lanes
    # carry exact zeros and contribute nothing).
    m_probs = jnp.sum(partials, axis=0) / jnp.float32(B)      # (Cp,)
    safe = jnp.where(m_probs > 0, m_probs, 1.0)
    return -jnp.sum(m_probs * jnp.log(safe))


def _ref_ent_loss(x):
    probs = jax.nn.softmax(x.astype(jnp.float32), axis=1)
    m = probs.mean(axis=0)
    return -(m * jnp.log(m)).sum()


if __name__ == "__main__":
    key = jax.random.PRNGKey(0)

    # Primary small demo shape: batch=8, class logits=32 (softmax over dim=1).
    x = jax.random.normal(key, (8, 32), dtype=jnp.float32)
    result = jax.block_until_ready(jax.jit(ent_loss)(x))
    ref = _ref_ent_loss(x)
    assert jnp.allclose(result, ref, atol=1e-5, rtol=1e-5), (result, ref)

    # Exercise class-lane overhang + boundary-tile row masking
    # (C % 128 != 0, B % 8 != 0) with no wrapper-side padded copies.
    x2 = jax.random.normal(jax.random.PRNGKey(1), (300, 257), dtype=jnp.float32)
    r2 = jax.block_until_ready(jax.jit(ent_loss)(x2))
    assert jnp.allclose(r2, _ref_ent_loss(x2), atol=1e-5, rtol=1e-5)

    # Exercise the multi-tile resident accumulator (interior fast path +
    # masked boundary tile), bf16 input.
    x3 = jax.random.normal(jax.random.PRNGKey(2), (1000, 32), dtype=jnp.bfloat16)
    r3 = jax.block_until_ready(jax.jit(functools.partial(ent_loss, tb=128))(x3))
    assert jnp.allclose(r3, _ref_ent_loss(x3), atol=2e-3, rtol=2e-3)

    print("KERNEL_OK")
</pallas_src>

<mosaic_0001>
module attributes {stable_mosaic.version = 11 : i64} {
  func.func @ent_partial_kernel(%arg0: i32, %arg1: i32, %arg2: memref<8x128xf32, #tpu.memory_space<vmem>>, %arg3: memref<8x128xf32, #tpu.memory_space<vmem>>) attributes {dimension_semantics = [#tpu.dimension_semantics<arbitrary>, #tpu.dimension_semantics<arbitrary>], iteration_bounds = array<i64: 1, 1>, scalar_prefetch = 0 : i64, scratch_operands = 0 : i64, tpu.core_type = #tpu.core_type<tc>, window_params = [{transform_indices = @transform_0, window_bounds = array<i64: 8, 128>}, {transform_indices = @transform_1, window_bounds = array<i64: 8, 128>}]} {
    %c0_i32 = arith.constant 0 : i32
    %0 = arith.cmpi eq, %arg1, %c0_i32 : i32
    %1 = arith.extui %0 : i1 to i32
    %c0_i32_0 = arith.constant 0 : i32
    %2 = arith.cmpi ne, %1, %c0_i32_0 : i32
    scf.if %2 {
      %cst_9 = arith.constant 0.000000e+00 : f32
      %24 = vector.broadcast %cst_9 : f32 to vector<8x128xf32>
      %c0_10 = arith.constant 0 : index
      %c0_11 = arith.constant 0 : index
      %25 = vector.load %arg3[%c0_10, %c0_11] : memref<8x128xf32, #tpu.memory_space<vmem>>, vector<8x128xf32>
      tpu.vector_store %arg3[%c0_10, %c0_11], %24 {strides = array<i32>} : memref<8x128xf32, #tpu.memory_space<vmem>>, vector<8x128xf32>,
    } else {
    }
    %c0 = arith.constant 0 : index
    %c0_1 = arith.constant 0 : index
    %3 = vector.load %arg2[%c0, %c0_1] : memref<8x128xf32, #tpu.memory_space<vmem>>, vector<8x128xf32>
    %4 = tpu.iota {dimensions = array<i32: 1>} : vector<8x128xi32>
    %c32_i32 = arith.constant 32 : i32
    %5 = vector.broadcast %c32_i32 : i32 to vector<8x128xi32>
    %6 = arith.cmpi slt, %4, %5 : vector<8x128xi32>
    %cst = arith.constant 0xFF800000 : f32
    %7 = vector.broadcast %cst : f32 to vector<8x128xf32>
    %8 = arith.select %6, %3, %7 : vector<8x128xi1>, vector<8x128xf32>
    %cst_2 = arith.constant dense<0xFF800000> : vector<8xf32>
    %9 = vector.multi_reduction <maximumf>, %8, %cst_2 [1] : vector<8x128xf32> to vector<8xf32>
    %10 = vector.shape_cast %9 : vector<8xf32> to vector<8x1xf32>
    %11 = vector.broadcast %10 : vector<8x1xf32> to vector<8x128xf32>
    %12 = arith.subf %8, %11 : vector<8x128xf32>
    %13 = math.exp %12 : vector<8x128xf32>
    %cst_3 = arith.constant dense<0.000000e+00> : vector<8xf32>
    %14 = vector.multi_reduction <add>, %13, %cst_3 [1] : vector<8x128xf32> to vector<8xf32>
    %15 = vector.shape_cast %14 : vector<8xf32> to vector<8x1xf32>
    %16 = tpu.reciprocal %15 : vector<8x1xf32> -> vector<8x1xf32>
    %17 = vector.broadcast %16 : vector<8x1xf32> to vector<8x128xf32>
    %18 = arith.mulf %13, %17 : vector<8x128xf32>
    %c0_4 = arith.constant 0 : index
    %c0_5 = arith.constant 0 : index
    %19 = vector.load %arg3[%c0_4, %c0_5] : memref<8x128xf32, #tpu.memory_space<vmem>>, vector<8x128xf32>
    %20 = vector.shape_cast %18 : vector<8x128xf32> to vector<1x8x128xf32>
    %cst_6 = arith.constant dense<0.000000e+00> : vector<8x128xf32>
    %21 = vector.multi_reduction <add>, %20, %cst_6 [0] : vector<1x8x128xf32> to vector<8x128xf32>
    %22 = arith.addf %19, %21 : vector<8x128xf32>
    %c0_7 = arith.constant 0 : index
    %c0_8 = arith.constant 0 : index
    %23 = vector.load %arg3[%c0_7, %c0_8] : memref<8x128xf32, #tpu.memory_space<vmem>>, vector<8x128xf32>
    tpu.vector_store %arg3[%c0_7, %c0_8], %22 {strides = array<i32>} : memref<8x128xf32, #tpu.memory_space<vmem>>, vector<8x128xf32>,
    return
  }
  func.func @transform_0(%arg0: i32, %arg1: i32) -> (i32, i32) {
    %c0_i32 = arith.constant 0 : i32
    %c0_i32_0 = arith.constant 0 : i32
    return %arg1, %c0_i32 : i32, i32
  }
  func.func @transform_1(%arg0: i32, %arg1: i32) -> (i32, i32) {
    %c0_i32 = arith.constant 0 : i32
    %c0_i32_0 = arith.constant 0 : i32
    return %arg0, %c0_i32 : i32, i32
  }
}

</mosaic_0001>

<bundles_post_ra>
// kernel: ent_loss.1
= control target key start
LH: loop header
LB: loop body
LE: loop exit
PB: predicated region body
PF: predicated region fallthrough
CT: control target
= control target key end

     0   :  { %6 = vsyncpa [#allocation3], 0  ;;  %s95_s9 = smov [#allocation2]   ;;  %s112_s0 = inlined_call_operand.hbm [shape: f32[8,32], index: 0, kind: input, shape index: {}]   ;;  %s113_s1 = inlined_call_operand.vmem [shape: f32[8,128], index: 1, kind: output, shape index: {}]  }
   0x1   :  { %s12_s8 = sshll.u32 %s112_s0, 4  ;;  %s14_s10 = sshll.u32 %s95_s9, 4  ;;  %s13_s8 = int_to_ptr.hbm [resolvable:$true] %s12_s8  ;;  %s15_s10 = int_to_ptr.vmem [resolvable:$true] %s14_s10 }
   0x2   :  { %17 = dma.hbm_to_vmem [thread:$0]  %s13_s8, 128, %s15_s10, [#allocation3]  }
   0x3   :  { %93 = dma.done.wait [#allocation3], 128  }
   0x4   :  { %94 = vsyncadd [#allocation3], 4294967168  ;;  %v28_v0 = vlaneseq  ;;  %v27_v2 = vld [vmem:[#allocation2] sm:$0xff] }
   0x6   :  { %v29_v1 = vand.u32 127, %v28_v0 }
   0x8   :  { %vm30_vm0 = vcmp.lt.s32.totalorder %v29_v1, 32 }
   0x9   :  { %v31_v3 = vsel %vm30_vm0, %v27_v2, -inf }
   0xa   :  { %32 = vmax.xlane.f32.xlu0 %v31_v3 }
  0x7d   :  { %v33_v4 = vpop.xlane.xlu0 %32 }
  0x7e   :  { %v34_v5 = vsub.f32 %v31_v3, %v33_v4 }
  0x80   :  { %v35_v6 = vmul.f32 1.442695, %v34_v5 }
  0x82   :  { %65 = vpow2.f32 %v35_v6 }
  0x88   :  { %v66_v7 = vpop.eup %65 }
  0x89   :  { %37 = vadd.xlane.f32.xlu0 %v66_v7 }
  0xfc   :  { %v38_v8 = vpop.xlane.xlu0 %37 }
  0xfd   :  { %67 = vrcp.f32 %v38_v8  ;;  %v50_v12 = vand.u32 2147483648, %v38_v8  ;;  %v48_v14 = vand.u32 2147483647, %v38_v8  ;;  %vm44_vm2 = vweird.f32 %v38_v8 }
  0xff   :  { %v51_v16 = vor.u32 1.1754944e-38, %v50_v12  ;;  %vm49_vm4 = vcmp.eq.f32.partialorder %v48_v14, 8.507059e+37 }
 0x103   :  { %v68_v9 = vpop.eup %67 }
 0x104   :  { %v40_v10 = vmul.f32 %v68_v9, %v38_v8  ;;  %vm45_vm1 = vweird.f32 %v68_v9 }
 0x105   :  { %vm46_vm3 = vmor %vm44_vm2, %vm45_vm1 }
 0x106   :  { %v41_v11 = vsub.f32 1.0, %v40_v10 }
 0x108   :  { %v42_v13 = vmul.f32 %v68_v9, %v41_v11 }
 0x10a   :  { %v43_v15 = vadd.f32 %v68_v9, %v42_v13 }
 0x10c   :  { %v47_v17 = vsel %vm46_vm3, %v68_v9, %v43_v15 }
 0x10d   :  { %v52_v18 = vsel %vm49_vm4, %v51_v16, %v47_v17 }
 0x10e   :  { %v53_v19 = vmul.f32 %v66_v7, %v52_v18 }
 0x110   :  { %57 = vst [vmem:[%s113_s1] sm:$0xff] %v53_v19 }
 0x111   :  { %62 = vsyncpa [#allocation3], 1 }

</bundles_post_ra>
